<compile_context>
chip_gen: v5e
topology: v5e:2x2
jax: 0.10.0
libtpu: 0.0.40
codegen_flags: <defaults>
</compile_context>

<pallas_src>
import functools

import jax
import jax.numpy as jnp
from jax import lax
from jax.experimental import pallas as pl
from jax.experimental.pallas import tpu as pltpu


def _conv_kernel(x_ref, w_ref, o_ref, *, nb, tile_h, w_out, cs, c_out, fused):
    """One (batch, row-tile) step of the strided conv.

    x_ref : (tile_h + nb - 1, Wb, cs)   space-to-depth input rows (+ halo)
    w_ref : (c_out, nb*nb*cs)           if fused
            (nb*nb, c_out, cs)          otherwise
    o_ref : (c_out, tile_h * w_out)     transposed (lane-dense) output tile
    """
    tm = tile_h * w_out
    parts = []
    for dh in range(nb):
        for dw in range(nb):
            # Contiguous (unstrided) tap-block read thanks to space-to-depth.
            blk = x_ref[pl.ds(dh, tile_h), pl.ds(dw, w_out), :]  # (tile_h, w_out, cs)
            parts.append(blk.reshape(tm, cs))

    nt_dims = (((1,), (1,)), ((), ()))  # contract last dim of both operands
    if fused:
        # Lane-aligned pieces -> one im2col patch, ONE matmul, depth nb*nb*cs.
        patch = jnp.concatenate(parts, axis=-1)                   # (tm, nb*nb*cs)
        acc = lax.dot_general(w_ref[...], patch, nt_dims,
                              preferred_element_type=jnp.float32)  # (c_out, tm)
    else:
        # cs not a multiple of 128: skip the unaligned minor-dim concatenate;
        # nb*nb matmuls of depth cs = stride^2*C_in (vs K*K of depth C_in).
        acc = jnp.zeros((c_out, tm), jnp.float32)
        for i in range(nb * nb):
            acc = acc + lax.dot_general(w_ref[i], parts[i], nt_dims,
                                        preferred_element_type=jnp.float32)

    o_ref[...] = acc.astype(o_ref.dtype)


def _pick_tile_h(h_out, w_out, wb, cs, nb, itemsize):
    # Target ~512 output rows (matmul M dim) per grid step, but keep the
    # double-buffered input block under a conservative 4 MiB budget so the
    # pipeline stays alive on every chip (incl. v7x's 64 MiB VMEM).
    tile_h = max(1, min(h_out, 512 // max(w_out, 1)))
    budget = 4 * 1024 * 1024
    while tile_h > 1 and 2 * (tile_h + nb - 1) * wb * cs * itemsize > budget:
        tile_h -= 1
    return tile_h


@functools.partial(jax.jit, static_argnums=(2, 3, 4))
def _forward_impl(x, weight, stride, padding, compute_dtype):
    B, C_in, H, W = x.shape
    C_out, C_in_w, K, K2 = weight.shape
    assert C_in == C_in_w and K == K2

    s = stride
    h_out = (H + 2 * padding - K) // s + 1
    w_out = (W + 2 * padding - K) // s + 1
    nb = (K - 1) // s + 1              # tap neighbourhood in s2d block units
    cs = s * s * C_in                  # channels after space-to-depth
    ck = nb * nb * cs                  # fused contraction depth
    fused = (cs % 128 == 0)            # lane-aligned -> single-matmul path

    op_dtype = compute_dtype if compute_dtype is not None else x.dtype
    itemsize = jnp.dtype(op_dtype).itemsize

    # ---- choose spatial (output-row) tiling --------------------------------
    wb_est = max(w_out + nb - 1, -(-(W + 2 * padding) // s))
    tile_h = _pick_tile_h(h_out, w_out, wb_est, cs, nb, itemsize)
    n_tiles = -(-h_out // tile_h)
    h_out_pad = n_tiles * tile_h
    tm = tile_h * w_out

    # ---- wrapper-side layout glue: pad + NHWC + space-to-depth -------------
    hb_need = h_out_pad + nb - 1
    wb_need = w_out + nb - 1
    hp = max(hb_need * s, -(-(H + 2 * padding) // s) * s)
    wp = max(wb_need * s, -(-(W + 2 * padding) // s) * s)
    xp = jnp.pad(x, ((0, 0), (0, 0),
                     (padding, hp - H - padding),
                     (padding, wp - W - padding)))
    xp = jnp.transpose(xp, (0, 2, 3, 1)).astype(op_dtype)        # (B, hp, wp, C_in)
    hb, wb = hp // s, wp // s
    x_s2d = xp.reshape(B, hb, s, wb, s, C_in)
    x_s2d = jnp.transpose(x_s2d, (0, 1, 3, 2, 4, 5)).reshape(B, hb, wb, cs)

    # Materialize the (nb-1)-row halo per row tile so the kernel's index_map
    # stays plainly Blocked (no overlapping-window index arithmetic).
    x_tiles = jnp.stack(
        [x_s2d[:, i * tile_h: i * tile_h + tile_h + nb - 1] for i in range(n_tiles)],
        axis=1)                                   # (B, n_tiles, tile_h+nb-1, wb, cs)

    # ---- flatten the weight once, in the wrapper ---------------------------
    w_pad = jnp.pad(weight, ((0, 0), (0, 0), (0, nb * s - K), (0, nb * s - K)))
    w_r = w_pad.reshape(C_out, C_in, nb, s, nb, s)   # dims: (co, c, dh, sh, dw, sw)
    if fused:
        w_flat = jnp.transpose(w_r, (0, 2, 4, 3, 5, 1)).reshape(C_out, ck)
        w_spec = pl.BlockSpec((C_out, ck), lambda b, t: (0, 0))
    else:
        w_flat = jnp.transpose(w_r, (2, 4, 0, 3, 5, 1)).reshape(nb * nb, C_out, cs)
        w_spec = pl.BlockSpec((nb * nb, C_out, cs), lambda b, t: (0, 0, 0))
    w_flat = w_flat.astype(op_dtype)

    kernel = functools.partial(
        _conv_kernel, nb=nb, tile_h=tile_h, w_out=w_out, cs=cs, c_out=C_out,
        fused=fused)

    out_bytes = B * n_tiles * C_out * tm * jnp.dtype(x.dtype).itemsize
    cost = pl.CostEstimate(
        flops=2 * B * n_tiles * tm * ck * C_out,
        transcendentals=0,
        bytes_accessed=int(x_tiles.size) * itemsize
                       + int(w_flat.size) * itemsize + out_bytes,
    )

    out = pl.pallas_call(
        kernel,
        out_shape=jax.ShapeDtypeStruct((B, n_tiles, C_out, tm), x.dtype),
        grid=(B, n_tiles),
        in_specs=[
            pl.BlockSpec((None, None, tile_h + nb - 1, wb, cs),
                         lambda b, t: (b, t, 0, 0, 0)),
            w_spec,
        ],
        out_specs=pl.BlockSpec((None, None, C_out, tm), lambda b, t: (b, t, 0, 0)),
        compiler_params=pltpu.CompilerParams(
            dimension_semantics=("parallel", "parallel")),
        cost_estimate=cost,
    )(x_tiles, w_flat)

    # (B, n_tiles, C_out, tile_h*w_out) -> NCHW
    out = out.reshape(B, n_tiles, C_out, tile_h, w_out)
    out = jnp.transpose(out, (0, 2, 1, 3, 4)).reshape(B, C_out, h_out_pad, w_out)
    return out[:, :, :h_out, :]


def interp_grad_conv_forward(x, weight, stride, padding, compute_dtype=None):
    """x: (B, C_in, H, W) NCHW; weight: (C_out, C_in, K, K) OIHW (PyTorch conv2d).

    compute_dtype: optional MXU operand dtype (e.g. jnp.bfloat16 on v6e/v7x);
    accumulation is always float32.
    """
    return _forward_impl(x, weight, stride, padding, compute_dtype)


def _reference_conv(x, weight, stride, padding):
    return lax.conv_general_dilated(
        x, weight,
        window_strides=(stride, stride),
        padding=[(padding, padding), (padding, padding)],
        dimension_numbers=("NCHW", "OIHW", "NCHW"),
    )


if __name__ == "__main__":
    key = jax.random.PRNGKey(0)
    k1, k2, k3, k4 = jax.random.split(key, 4)

    def xavier(k, c_out, c_in, ksz):
        fan_in, fan_out = c_in * ksz * ksz, c_out * ksz * ksz
        std = (2.0 / (fan_in + fan_out)) ** 0.5
        return std * jax.random.normal(k, (c_out, c_in, ksz, ksz), jnp.float32)

    K, STRIDE, PAD, H = 3, 2, 1, 16

    # Case 1: the module's toy config (stride^2*C_in = 16 -> accumulated-dot path).
    B, C_in, C_out = 2, 4, 8
    x = jax.random.normal(k1, (B, C_in, H, H), dtype=jnp.float32)
    w = xavier(k2, C_out, C_in, K)
    out = jax.block_until_ready(interp_grad_conv_forward(x, w, STRIDE, PAD))
    ref = _reference_conv(x, w, STRIDE, PAD)
    assert out.shape == ref.shape, (out.shape, ref.shape)
    assert jnp.allclose(out, ref, atol=1e-4, rtol=1e-4), "mismatch (toy config)"

    # Case 2: lane-aligned channels (stride^2*C_in = 128) exercising the fully
    # fused single-matmul (im2col) path with lane-dense stores.
    B2, C_in2, C_out2 = 2, 32, 16
    x2 = jax.random.normal(k3, (B2, C_in2, H, H), dtype=jnp.float32)
    w2 = xavier(k4, C_out2, C_in2, K)
    out2 = jax.block_until_ready(interp_grad_conv_forward(x2, w2, STRIDE, PAD))
    ref2 = _reference_conv(x2, w2, STRIDE, PAD)
    assert out2.shape == ref2.shape, (out2.shape, ref2.shape)
    assert jnp.allclose(out2, ref2, atol=1e-4, rtol=1e-4), "mismatch (fused path)"

    print("KERNEL_OK")
</pallas_src>

<mosaic_0001>
module attributes {stable_mosaic.version = 11 : i64} {
  func.func @_conv_kernel(%arg0: i32, %arg1: i32, %arg2: memref<1x1x9x9x16xf32, #tpu.memory_space<vmem>>, %arg3: memref<4x8x16xf32, #tpu.memory_space<vmem>>, %arg4: memref<1x1x8x64xf32, #tpu.memory_space<vmem>>) attributes {dimension_semantics = [#tpu.dimension_semantics<parallel>, #tpu.dimension_semantics<parallel>], iteration_bounds = array<i64: 2, 1>, scalar_prefetch = 0 : i64, scratch_operands = 0 : i64, tpu.core_type = #tpu.core_type<tc>, window_params = [{transform_indices = @transform_0, window_bounds = array<i64: 1, 1, 9, 9, 16>}, {pipeline_mode = #tpu.pipeline_mode<synchronous>, transform_indices = @transform_1, window_bounds = array<i64: 4, 8, 16>}, {transform_indices = @transform_2, window_bounds = array<i64: 1, 1, 8, 64>}]} {
    %c0 = arith.constant 0 : index
    %c0_0 = arith.constant 0 : index
    %c0_1 = arith.constant 0 : index
    %c0_2 = arith.constant 0 : index
    %c0_3 = arith.constant 0 : index
    %0 = vector.load %arg2[%c0, %c0_0, %c0_1, %c0_2, %c0_3] : memref<1x1x9x9x16xf32, #tpu.memory_space<vmem>>, vector<1x1x8x8x16xf32>
    %1 = vector.shape_cast %0 : vector<1x1x8x8x16xf32> to vector<8x8x16xf32>
    %2 = vector.shape_cast %1 : vector<8x8x16xf32> to vector<64x16xf32>
    %c0_4 = arith.constant 0 : index
    %c0_5 = arith.constant 0 : index
    %c0_6 = arith.constant 0 : index
    %c1 = arith.constant 1 : index
    %c0_7 = arith.constant 0 : index
    %3 = vector.load %arg2[%c0_4, %c0_5, %c0_6, %c1, %c0_7] : memref<1x1x9x9x16xf32, #tpu.memory_space<vmem>>, vector<1x1x8x8x16xf32>
    %4 = vector.shape_cast %3 : vector<1x1x8x8x16xf32> to vector<8x8x16xf32>
    %5 = vector.shape_cast %4 : vector<8x8x16xf32> to vector<64x16xf32>
    %c0_8 = arith.constant 0 : index
    %c0_9 = arith.constant 0 : index
    %c1_10 = arith.constant 1 : index
    %c0_11 = arith.constant 0 : index
    %c0_12 = arith.constant 0 : index
    %6 = vector.load %arg2[%c0_8, %c0_9, %c1_10, %c0_11, %c0_12] : memref<1x1x9x9x16xf32, #tpu.memory_space<vmem>>, vector<1x1x8x8x16xf32>
    %7 = vector.shape_cast %6 : vector<1x1x8x8x16xf32> to vector<8x8x16xf32>
    %8 = vector.shape_cast %7 : vector<8x8x16xf32> to vector<64x16xf32>
    %c0_13 = arith.constant 0 : index
    %c0_14 = arith.constant 0 : index
    %c1_15 = arith.constant 1 : index
    %c1_16 = arith.constant 1 : index
    %c0_17 = arith.constant 0 : index
    %9 = vector.load %arg2[%c0_13, %c0_14, %c1_15, %c1_16, %c0_17] : memref<1x1x9x9x16xf32, #tpu.memory_space<vmem>>, vector<1x1x8x8x16xf32>
    %10 = vector.shape_cast %9 : vector<1x1x8x8x16xf32> to vector<8x8x16xf32>
    %11 = vector.shape_cast %10 : vector<8x8x16xf32> to vector<64x16xf32>
    %cst = arith.constant 0.000000e+00 : f32
    %12 = vector.broadcast %cst : f32 to vector<8x64xf32>
    %c0_18 = arith.constant 0 : index
    %c0_19 = arith.constant 0 : index
    %c0_20 = arith.constant 0 : index
    %13 = vector.load %arg3[%c0_18, %c0_19, %c0_20] : memref<4x8x16xf32, #tpu.memory_space<vmem>>, vector<1x8x16xf32>
    %14 = vector.shape_cast %13 : vector<1x8x16xf32> to vector<8x16xf32>
    %cst_21 = arith.constant dense<0.000000e+00> : vector<8x64xf32>
    %15 = tpu.matmul %14, %2, %cst_21 {dimension_numbers = #tpu.dot_dimension_numbers<[1], [1], [0], [0], [0, 0, 1, 0], [], []>} : vector<8x16xf32>, vector<64x16xf32>, vector<8x64xf32> -> vector<8x64xf32>
    %16 = arith.addf %12, %15 : vector<8x64xf32>
    %c1_22 = arith.constant 1 : index
    %c0_23 = arith.constant 0 : index
    %c0_24 = arith.constant 0 : index
    %17 = vector.load %arg3[%c1_22, %c0_23, %c0_24] : memref<4x8x16xf32, #tpu.memory_space<vmem>>, vector<1x8x16xf32>
    %18 = vector.shape_cast %17 : vector<1x8x16xf32> to vector<8x16xf32>
    %cst_25 = arith.constant dense<0.000000e+00> : vector<8x64xf32>
    %19 = tpu.matmul %18, %5, %cst_25 {dimension_numbers = #tpu.dot_dimension_numbers<[1], [1], [0], [0], [0, 0, 1, 0], [], []>} : vector<8x16xf32>, vector<64x16xf32>, vector<8x64xf32> -> vector<8x64xf32>
    %20 = arith.addf %16, %19 : vector<8x64xf32>
    %c2 = arith.constant 2 : index
    %c0_26 = arith.constant 0 : index
    %c0_27 = arith.constant 0 : index
    %21 = vector.load %arg3[%c2, %c0_26, %c0_27] : memref<4x8x16xf32, #tpu.memory_space<vmem>>, vector<1x8x16xf32>
    %22 = vector.shape_cast %21 : vector<1x8x16xf32> to vector<8x16xf32>
    %cst_28 = arith.constant dense<0.000000e+00> : vector<8x64xf32>
    %23 = tpu.matmul %22, %8, %cst_28 {dimension_numbers = #tpu.dot_dimension_numbers<[1], [1], [0], [0], [0, 0, 1, 0], [], []>} : vector<8x16xf32>, vector<64x16xf32>, vector<8x64xf32> -> vector<8x64xf32>
    %24 = arith.addf %20, %23 : vector<8x64xf32>
    %c3 = arith.constant 3 : index
    %c0_29 = arith.constant 0 : index
    %c0_30 = arith.constant 0 : index
    %25 = vector.load %arg3[%c3, %c0_29, %c0_30] : memref<4x8x16xf32, #tpu.memory_space<vmem>>, vector<1x8x16xf32>
    %26 = vector.shape_cast %25 : vector<1x8x16xf32> to vector<8x16xf32>
    %cst_31 = arith.constant dense<0.000000e+00> : vector<8x64xf32>
    %27 = tpu.matmul %26, %11, %cst_31 {dimension_numbers = #tpu.dot_dimension_numbers<[1], [1], [0], [0], [0, 0, 1, 0], [], []>} : vector<8x16xf32>, vector<64x16xf32>, vector<8x64xf32> -> vector<8x64xf32>
    %28 = arith.addf %24, %27 : vector<8x64xf32>
    %c0_32 = arith.constant 0 : index
    %c0_33 = arith.constant 0 : index
    %c0_34 = arith.constant 0 : index
    %c0_35 = arith.constant 0 : index
    %29 = vector.load %arg4[%c0_32, %c0_33, %c0_34, %c0_35] : memref<1x1x8x64xf32, #tpu.memory_space<vmem>>, vector<1x1x8x64xf32>
    %30 = vector.shape_cast %29 : vector<1x1x8x64xf32> to vector<8x64xf32>
    %31 = vector.shape_cast %28 : vector<8x64xf32> to vector<1x1x8x64xf32>
    tpu.vector_store %arg4[%c0_32, %c0_33, %c0_34, %c0_35], %31 {strides = array<i32>} : memref<1x1x8x64xf32, #tpu.memory_space<vmem>>, vector<1x1x8x64xf32>,
    return
  }
  func.func @transform_0(%arg0: i32, %arg1: i32) -> (i32, i32, i32, i32, i32) {
    %c0_i32 = arith.constant 0 : i32
    %c0_i32_0 = arith.constant 0 : i32
    %c0_i32_1 = arith.constant 0 : i32
    %c0_i32_2 = arith.constant 0 : i32
    return %arg0, %arg1, %c0_i32, %c0_i32_0, %c0_i32_1 : i32, i32, i32, i32, i32
  }
  func.func @transform_1(%arg0: i32, %arg1: i32) -> (i32, i32, i32) {
    %c0_i32 = arith.constant 0 : i32
    %c0_i32_0 = arith.constant 0 : i32
    %c0_i32_1 = arith.constant 0 : i32
    %c0_i32_2 = arith.constant 0 : i32
    return %c0_i32, %c0_i32_0, %c0_i32_1 : i32, i32, i32
  }
  func.func @transform_2(%arg0: i32, %arg1: i32) -> (i32, i32, i32, i32) {
    %c0_i32 = arith.constant 0 : i32
    %c0_i32_0 = arith.constant 0 : i32
    %c0_i32_1 = arith.constant 0 : i32
    return %arg0, %arg1, %c0_i32, %c0_i32_0 : i32, i32, i32, i32
  }
}

</mosaic_0001>

<bundles_post_ra>
// kernel: _forward_impl.1
= control target key start
LH: loop header
LB: loop body
LE: loop exit
PB: predicated region body
PF: predicated region fallthrough
CT: control target
= control target key end

     0   :  { %s617_s9 = smov 0   ;;  %s619_s10 = smov 0   ;;  %s722_s0 = inlined_call_operand.vmem [shape: f32[2,1,9,9,16], index: 0, kind: input, shape index: {}]   ;;  %s723_s1 = inlined_call_operand.vmem [shape: f32[4,8,16], index: 1, kind: input, shape index: {}]   ;;  %s724_s2 = inlined_call_operand.vmem [shape: f32[2,1,8,64], index: 2, kind: output, shape index: {}]  }
   0x1   :  { %s621_s11 = smov 0  }
   0x2 LB: > { %s24_s12 = sadd.s32 1, %s596_s10  ;;  %p493_p0 = scmp.ge.s32.totalorder %s600_s11, 1  ;;  %s600_s11 = sphi %s621_s11, %s12_s11   ;;  %s596_s10 = sphi %s619_s10, %s726_s10   ;;  %s592_s9 = sphi %s617_s9, %s725_s9  }
   0x3   : > { %p26_p1 = scmp.ge.s32.totalorder %s24_s12, 2  ;;  %p132_p2 = scmp.lt.s32.totalorder %s600_s11, 3 }
   0x5   : > { %s728_s12 = smov (%p26_p1, %s24_s12), 0  ;;  %p133_p3 = pnand %p493_p0, %p132_p2 }
   0x6   : > { %p160_p4 = scmp.lt.s32.totalorder (!%p133_p3), %s592_s9, 1 }
   0x7   : > { %136 = sbr.rel (%p133_p3) target bundleno = 185 (0xb9), region = 28 }
   0xc   : > { %s730_s9 = smov (!%p160_p4, %s592_s9), 1  ;;  %vm212_vm0 = vcmask 130048   ;;  %v531_v18 = vld [vmem:[%s723_s1 + $0x10] sm:$0xff]  ;;  %v541_v19 = vld [vmem:[%s723_s1 + $0x18] sm:$0xff]  ;;  %v512_v20 = vld [vmem:[%s723_s1 + $0x8] sm:$0xff]  ;;  %vm407_vm1 = vcmask 523264  }
   0xd   : > { %s553_s13 = smul.u32 144, %s730_s9  ;;  %v209_v21 = vld [vmem:[%s723_s1] sm:$0xff]  ;;  %s495_s25 = sshll.u32 %s730_s9, 3 }
   0xe   : > { %s175_s28 = scalar_lea.vmem %s724_s2, %s495_s25 }
   0xf   : > { %s641_s16 = scalar_lea.vmem %s722_s0, %s553_s13 }
  0x10   : > { %v503_v0 = vld [vmem:[%s641_s16 + $0x80] sm:$0xff]  ;;  %v191_v2 = vld [vmem:[%s641_s16 + $0x71] sm:$0xff] }
  0x11   : > { %v511_v1 = vld [vmem:[%s641_s16 + $0x81] sm:$0xff]  ;;  %532 = vmatpush.xpose.msk.msra.mxu2 %vm212_vm0, %v503_v0  ;;  %v183_v3 = vld [vmem:[%s641_s16 + $0x70] sm:$0xff]  ;;  %513 = vmatpush.xpose.msk.msra.mxu0 %vm212_vm0, %v191_v2 }
  0x12   : > { %542 = vmatpush.xpose.msk.msra.mxu3 %vm212_vm0, %v511_v1  ;;  %522 = vmatpush.xpose.msk.msra.mxu1 %vm212_vm0, %v183_v3  ;;  %v190_v4 = vld [vmem:[%s641_s16 + $0x61] sm:$0xff]  ;;  %v189_v6 = vld [vmem:[%s641_s16 + $0x51] sm:$0xff] }
  0x13   : > { %v182_v5 = vld [vmem:[%s641_s16 + $0x60] sm:$0xff]  ;;  %v181_v7 = vld [vmem:[%s641_s16 + $0x50] sm:$0xff] }
  0x14   : > { %v188_v8 = vld [vmem:[%s641_s16 + $0x41] sm:$0xff]  ;;  %v187_v10 = vld [vmem:[%s641_s16 + $0x31] sm:$0xff] }
  0x15   : > { %533 = vmatpush.xpose.msk.msra.mxu2 %vm212_vm0, %v183_v3  ;;  %514 = vmatpush.xpose.msk.msra.mxu0 %vm212_vm0, %v190_v4  ;;  %v180_v9 = vld [vmem:[%s641_s16 + $0x40] sm:$0xff]  ;;  %v179_v11 = vld [vmem:[%s641_s16 + $0x30] sm:$0xff] }
  0x16   : > { %543 = vmatpush.xpose.msk.msra.mxu3 %vm212_vm0, %v191_v2  ;;  %523 = vmatpush.xpose.msk.msra.mxu1 %vm212_vm0, %v182_v5  ;;  %v186_v12 = vld [vmem:[%s641_s16 + $0x21] sm:$0xff]  ;;  %v185_v14 = vld [vmem:[%s641_s16 + $0x11] sm:$0xff] }
  0x17   : > { %v178_v13 = vld [vmem:[%s641_s16 + $0x20] sm:$0xff]  ;;  %v177_v15 = vld [vmem:[%s641_s16 + $0x10] sm:$0xff] }
  0x18   : > { %v184_v16 = vld [vmem:[%s641_s16 + $0x1] sm:$0xff] }
  0x19   : > { %534 = vmatpush.xpose.msk.msra.mxu2 %vm212_vm0, %v182_v5  ;;  %515 = vmatpush.xpose.msk.msra.mxu0 %vm212_vm0, %v189_v6  ;;  %v176_v17 = vld [vmem:[%s641_s16] sm:$0xff] }
  0x1a   : > { %544 = vmatpush.xpose.msk.msra.mxu3 %vm212_vm0, %v190_v4  ;;  %524 = vmatpush.xpose.msk.msra.mxu1 %vm212_vm0, %v181_v7 }
  0x1d   : > { %535 = vmatpush.xpose.msk.msra.mxu2 %vm212_vm0, %v181_v7  ;;  %516 = vmatpush.xpose.msk.msra.mxu0 %vm212_vm0, %v188_v8 }
  0x1e   : > { %545 = vmatpush.xpose.msk.msra.mxu3 %vm212_vm0, %v189_v6  ;;  %525 = vmatpush.xpose.msk.msra.mxu1 %vm212_vm0, %v180_v9 }
  0x21   : > { %536 = vmatpush.xpose.msk.msra.mxu2 %vm212_vm0, %v180_v9  ;;  %517 = vmatpush.xpose.msk.msra.mxu0 %vm212_vm0, %v187_v10 }
  0x22   : > { %546 = vmatpush.xpose.msk.msra.mxu3 %vm212_vm0, %v188_v8  ;;  %526 = vmatpush.xpose.msk.msra.mxu1 %vm212_vm0, %v179_v11 }
  0x25   : > { %537 = vmatpush.xpose.msk.msra.mxu2 %vm212_vm0, %v179_v11  ;;  %518 = vmatpush.xpose.msk.msra.mxu0 %vm212_vm0, %v186_v12 }
  0x26   : > { %547 = vmatpush.xpose.msk.msra.mxu3 %vm212_vm0, %v187_v10  ;;  %527 = vmatpush.xpose.msk.msra.mxu1 %vm212_vm0, %v178_v13 }
  0x29   : > { %538 = vmatpush.xpose.msk.msra.mxu2 %vm212_vm0, %v178_v13  ;;  %519 = vmatpush.xpose.msk.msra.mxu0 %vm212_vm0, %v185_v14 }
  0x2a   : > { %548 = vmatpush.xpose.msk.msra.mxu3 %vm212_vm0, %v186_v12  ;;  %528 = vmatpush.xpose.msk.msra.mxu1 %vm212_vm0, %v177_v15 }
  0x2d   : > { %539 = vmatpush.xpose.msk.msra.mxu2 %vm212_vm0, %v177_v15  ;;  %520 = vmatpush.xpose.msk.msra.mxu0 %vm212_vm0, %v184_v16 }
  0x2e   : > { %549 = vmatpush.xpose.msk.msra.mxu3 %vm212_vm0, %v185_v14  ;;  %529 = vmatpush.xpose.msk.msra.mxu1 %vm212_vm0, %v176_v17 }
  0x30   : > { %540 = vmatmul.msk.f32.vlgmr.msra.gmra.mxu2 %vm212_vm0, %v531_v18  ;;  %521 = vmatmul.msk.f32.vlgmr.msra.gmra.mxu0 %vm212_vm0, %v512_v20 }
  0x31   : > { %550 = vmatmul.msk.f32.vlgmr.msra.gmra.mxu3 %vm212_vm0, %v541_v19  ;;  %530 = vmatmul.msk.f32.vlgmr.msra.gmra.mxu1 %vm212_vm0, %v209_v21 }
  0xad   : > { %v257_v22 = vpop.f32.mrf.mxu0 }
  0xae   : > { %v304_v23 = vpop.f32.mrf.mxu1 }
  0xaf   : > { %v305_v24 = vadd.f32 %v304_v23, %v257_v22 }
  0xb3   : > { %v353_v25 = vpop.f32.mrf.mxu2 }
  0xb4   : > { %v403_v26 = vpop.f32.mrf.mxu3  ;;  %v356_v27 = vadd.f32 %v353_v25, %v305_v24 }
  0xb6   : > { %v406_v28 = vadd.f32 %v403_v26, %v356_v27 }
  0xb8   : > { %408 = vst.msk [vmem:[%s175_s28] sm:$0xff] %vm407_vm1, %v406_v28 }
  0xb9 PF: > { %s12_s11 = sadd.s32 1, %s600_s11   ;;  %s725_s9 = smov %s596_s10 }
  0xba   : > { %p9_p5 = scmp.ge.s32.totalorder %s12_s11, 4   ;;  %s726_s10 = smov %s728_s12 }
  0xbc   :  { %11 = sbr.rel (!%p9_p5) target bundleno = 2 (0x2), region = 62 }

</bundles_post_ra>
